<compile_context>
chip_gen: v6e
topology: v6e:2x2x1
jax: 0.10.0
libtpu: 0.0.40
codegen_flags: <defaults>
</compile_context>

<pallas_src>
import functools

import jax
import jax.numpy as jnp
from jax.experimental import pallas as pl
from jax.experimental.pallas import tpu as pltpu

LANE = 128
SUBLANE = 8


def _round_up(x, m):
    return ((x + m - 1) // m) * m


# ----------------------------- Pallas kernel -------------------------------

def _conv_gap_head_kernel(x_ref, wc_ref, bc_ref, wh_ref, bh_ref, o_ref, acc_ref,
                          *, tile_m, F_pad, m_valid):
    """Fused stem conv (single im2col matmul) + bias + ReLU + GAP + head.

    Grid = (B, R); R = M_pad // tile_m pixel tiles (reduction axis, last).

    x_ref  : (1, tile_m, 9C)  im2col rows for tile_m output pixels (bf16/f32)
    wc_ref : (9C, F_pad)      conv weight, tap-major rows, F zero-padded to 128
    bc_ref : (1, F_pad)  f32  conv bias (zero-padded)
    wh_ref : (F_pad, NC_pad)  f32 head weight (zero-padded rows/cols)
    bh_ref : (1, NC_pad) f32  head bias (zero-padded)
    o_ref  : (1, 8, NC_pad)   logits broadcast over 8 sublanes ((8,128)-aligned)
    acc_ref: (8, F_pad)  f32  per-sublane partial sums of ReLU(conv) features
    """
    r = pl.program_id(1)
    num_r = pl.num_programs(1)

    @pl.when(r == 0)
    def _init():
        acc_ref[...] = jnp.zeros_like(acc_ref)

    # One MXU matmul per tile: (tile_m, 9C) x (9C, F_pad), f32 accumulation.
    xt = x_ref[0]
    feats = jnp.dot(xt, wc_ref[...], preferred_element_type=jnp.float32)
    feats = jnp.maximum(feats + bc_ref[...], 0.0)            # bias + ReLU (f32)

    if m_valid % tile_m != 0:
        # Mask padded pixel rows (only traced when padding actually exists).
        pix = r * tile_m + jax.lax.broadcasted_iota(jnp.int32, (tile_m, 1), 0)
        feats = jnp.where(pix < m_valid, feats, 0.0)

    # Per-sublane partial GAP sums: pure VPU vreg adds, no per-step XLU reduce.
    acc_ref[...] += feats.reshape(tile_m // SUBLANE, SUBLANE, F_pad).sum(axis=0)

    @pl.when(r == num_r - 1)
    def _finalize():
        total = jnp.sum(acc_ref[...], axis=0, keepdims=True)       # (1, F_pad)
        pooled = jnp.broadcast_to(total * (1.0 / m_valid), (SUBLANE, F_pad))
        logits = jnp.dot(pooled, wh_ref[...],
                         preferred_element_type=jnp.float32) + bh_ref[...]
        o_ref[0] = logits.astype(o_ref.dtype)


# ----------------------------- pallas_call wrapper --------------------------

def fused_conv_gap_head(x_patches, wc, bc, wh, bh, *, tile_m, m_valid):
    B, M_pad, K = x_patches.shape
    F_pad = wc.shape[-1]
    NC_pad = wh.shape[-1]
    assert M_pad % tile_m == 0 and tile_m % SUBLANE == 0
    R = M_pad // tile_m

    kernel = functools.partial(_conv_gap_head_kernel,
                               tile_m=tile_m, F_pad=F_pad, m_valid=m_valid)

    cost = pl.CostEstimate(
        flops=2 * B * M_pad * K * F_pad + 2 * B * SUBLANE * F_pad * NC_pad,
        transcendentals=0,
        bytes_accessed=(int(x_patches.size) * x_patches.dtype.itemsize
                        + int(wc.size) * wc.dtype.itemsize
                        + int(bc.size + wh.size + bh.size) * 4
                        + B * SUBLANE * NC_pad * 4),
    )

    grid_spec = pltpu.PrefetchScalarGridSpec(
        num_scalar_prefetch=0,
        grid=(B, R),
        in_specs=[
            pl.BlockSpec((1, tile_m, K), lambda b, r: (b, r, 0)),
            pl.BlockSpec((K, F_pad), lambda b, r: (0, 0)),
            pl.BlockSpec((1, F_pad), lambda b, r: (0, 0)),
            pl.BlockSpec((F_pad, NC_pad), lambda b, r: (0, 0)),
            pl.BlockSpec((1, NC_pad), lambda b, r: (0, 0)),
        ],
        out_specs=pl.BlockSpec((1, SUBLANE, NC_pad), lambda b, r: (b, 0, 0)),
        scratch_shapes=[pltpu.VMEM((SUBLANE, F_pad), jnp.float32)],
    )

    return pl.pallas_call(
        kernel,
        out_shape=jax.ShapeDtypeStruct((B, SUBLANE, NC_pad), jnp.float32),
        grid_spec=grid_spec,
        compiler_params=pltpu.CompilerParams(
            dimension_semantics=("parallel", "arbitrary"),
            vmem_limit_bytes=48 * 1024 * 1024,   # < v7x 64 MiB; raise on v5e/v6e
        ),
        cost_estimate=cost,
    )(x_patches, wc, bc, wh, bh)


# ----------------------------- Python model wrapper --------------------------

class BaseTimmWrapperPallas:
    """Synthetic stand-in for BaseTimmWrapper: stem conv -> ReLU -> GAP -> Linear."""

    def __init__(self, in_chans, num_classes, feat_dim=32, key=None,
                 compute_dtype=jnp.bfloat16, tile_m=512):
        if key is None:
            key = jax.random.PRNGKey(0)
        k1, k2, k3, k4 = jax.random.split(key, 4)
        self.in_chans = in_chans
        self.feat_dim = feat_dim
        self.num_classes = num_classes
        self.compute_dtype = compute_dtype   # MXU operands; accumulation is f32
        self.tile_m = tile_m                 # pixels per grid step

        # PyTorch-layout parameters (as the wrapped nn.Module would hold them).
        self.conv_w = jax.random.normal(k1, (feat_dim, in_chans, 3, 3), jnp.float32) * 0.1
        self.conv_b = jax.random.normal(k2, (feat_dim,), jnp.float32) * 0.01
        self.head_w = jax.random.normal(k3, (num_classes, feat_dim), jnp.float32) * 0.1
        self.head_b = jax.random.normal(k4, (num_classes,), jnp.float32) * 0.01

        # Kernel-side lane-dense padded parameter layouts (built once).
        F_pad = _round_up(max(feat_dim, LANE), LANE)
        NC_pad = _round_up(max(num_classes, LANE), LANE)
        self.F_pad, self.NC_pad = F_pad, NC_pad
        K = 9 * in_chans

        # (F, C, 3, 3) -> (3, 3, C, F) -> (9C, F): rows ordered (di, dj, c),
        # matching the wrapper-side im2col tap order.
        wc = jnp.transpose(self.conv_w, (2, 3, 1, 0)).reshape(K, feat_dim)
        self.wc_pad = (jnp.zeros((K, F_pad), jnp.float32)
                       .at[:, :feat_dim].set(wc))
        self.bc_pad = (jnp.zeros((1, F_pad), jnp.float32)
                       .at[0, :feat_dim].set(self.conv_b))
        wh = jnp.transpose(self.head_w)                       # (F, NC)
        self.wh_pad = (jnp.zeros((F_pad, NC_pad), jnp.float32)
                       .at[:feat_dim, :num_classes].set(wh))
        self.bh_pad = (jnp.zeros((1, NC_pad), jnp.float32)
                       .at[0, :num_classes].set(self.head_b))

    def __call__(self, x_nchw):
        B, C, H, W = x_nchw.shape
        assert C == self.in_chans
        M = H * W
        tile_m = min(self.tile_m, _round_up(M, SUBLANE))
        M_pad = _round_up(M, tile_m)

        # NCHW -> NHWC, 'same' halo pad, gather the 9 taps per output pixel and
        # fold them into a lane-dense minor dim of size 9*C (im2col rows).
        x = jnp.transpose(x_nchw, (0, 2, 3, 1))
        xp = jnp.pad(x, ((0, 0), (1, 1), (1, 1), (0, 0)))
        taps = [xp[:, di:di + H, dj:dj + W, :]
                for di in range(3) for dj in range(3)]
        patches = jnp.concatenate(taps, axis=-1).reshape(B, M, 9 * C)
        if M_pad != M:
            patches = jnp.pad(patches, ((0, 0), (0, M_pad - M), (0, 0)))
        patches = patches.astype(self.compute_dtype)

        out = fused_conv_gap_head(
            patches,
            self.wc_pad.astype(self.compute_dtype),   # MXU operands in bf16
            self.bc_pad, self.wh_pad, self.bh_pad,    # elementwise/head in f32
            tile_m=tile_m, m_valid=M)                 # (B, 8, NC_pad)
        return out[:, 0, :self.num_classes]           # (B, num_classes)


def _reference_forward(model, x_nchw):
    """Pure-JAX reference (uses the same bf16-rounded MXU operands)."""
    cd = model.compute_dtype
    x = jnp.transpose(x_nchw, (0, 2, 3, 1)).astype(cd).astype(jnp.float32)
    w = jnp.transpose(model.conv_w, (2, 3, 1, 0)).astype(cd).astype(jnp.float32)
    y = jax.lax.conv_general_dilated(
        x, w, window_strides=(1, 1), padding="SAME",
        dimension_numbers=("NHWC", "HWIO", "NHWC")) + model.conv_b
    y = jnp.maximum(y, 0.0)
    pooled = jnp.mean(y, axis=(1, 2))                 # [B, F]
    return pooled @ model.head_w.T + model.head_b     # [B, NC]


if __name__ == "__main__":
    key = jax.random.PRNGKey(0)
    kx, kp = jax.random.split(key)

    B, C, H, W = 2, 4, 16, 16
    num_classes = 8

    x = jax.random.normal(kx, (B, C, H, W), jnp.float32)   # NCHW input (PyTorch)

    model = BaseTimmWrapperPallas(in_chans=C, num_classes=num_classes,
                                  feat_dim=32, key=kp)

    out = jax.block_until_ready(model(x))

    ref = _reference_forward(model, x)
    assert out.shape == (B, num_classes)
    assert jnp.allclose(out, ref, atol=2e-3, rtol=2e-3), "mismatch vs JAX reference"

    print("KERNEL_OK")
</pallas_src>

<mosaic_0001>
module attributes {stable_mosaic.version = 11 : i64} {
  func.func @_conv_gap_head_kernel(%arg0: i32, %arg1: i32, %arg2: memref<1x256x36xbf16, #tpu.memory_space<vmem>>, %arg3: memref<36x128xbf16, #tpu.memory_space<vmem>>, %arg4: memref<1x128xf32, #tpu.memory_space<vmem>>, %arg5: memref<128x128xf32, #tpu.memory_space<vmem>>, %arg6: memref<1x128xf32, #tpu.memory_space<vmem>>, %arg7: memref<1x8x128xf32, #tpu.memory_space<vmem>>, %arg8: memref<8x128xf32, #tpu.memory_space<vmem>>) attributes {dimension_semantics = [#tpu.dimension_semantics<parallel>, #tpu.dimension_semantics<arbitrary>], iteration_bounds = array<i64: 2, 1>, scalar_prefetch = 0 : i64, scratch_operands = 1 : i64, tpu.core_type = #tpu.core_type<tc>, window_params = [{transform_indices = @transform_0, window_bounds = array<i64: 1, 256, 36>}, {pipeline_mode = #tpu.pipeline_mode<synchronous>, transform_indices = @transform_1, window_bounds = array<i64: 36, 128>}, {pipeline_mode = #tpu.pipeline_mode<synchronous>, transform_indices = @transform_2, window_bounds = array<i64: 1, 128>}, {pipeline_mode = #tpu.pipeline_mode<synchronous>, transform_indices = @transform_3, window_bounds = array<i64: 128, 128>}, {pipeline_mode = #tpu.pipeline_mode<synchronous>, transform_indices = @transform_4, window_bounds = array<i64: 1, 128>}, {transform_indices = @transform_5, window_bounds = array<i64: 1, 8, 128>}]} {
    %c0_i32 = arith.constant 0 : i32
    %0 = arith.cmpi eq, %arg1, %c0_i32 : i32
    %1 = arith.extui %0 : i1 to i32
    %c0_i32_0 = arith.constant 0 : i32
    %2 = arith.cmpi ne, %1, %c0_i32_0 : i32
    scf.if %2 {
      %cst_15 = arith.constant 0.000000e+00 : f32
      %20 = vector.broadcast %cst_15 : f32 to vector<8x128xf32>
      %c0_16 = arith.constant 0 : index
      %c0_17 = arith.constant 0 : index
      %21 = vector.load %arg8[%c0_16, %c0_17] : memref<8x128xf32, #tpu.memory_space<vmem>>, vector<8x128xf32>
      tpu.vector_store %arg8[%c0_16, %c0_17], %20 {strides = array<i32>} : memref<8x128xf32, #tpu.memory_space<vmem>>, vector<8x128xf32>,
    } else {
    }
    %c0 = arith.constant 0 : index
    %c0_1 = arith.constant 0 : index
    %c0_2 = arith.constant 0 : index
    %3 = vector.load %arg2[%c0, %c0_1, %c0_2] : memref<1x256x36xbf16, #tpu.memory_space<vmem>>, vector<1x256x36xbf16>
    %4 = vector.shape_cast %3 : vector<1x256x36xbf16> to vector<256x36xbf16>
    %c0_3 = arith.constant 0 : index
    %c0_4 = arith.constant 0 : index
    %5 = vector.load %arg3[%c0_3, %c0_4] : memref<36x128xbf16, #tpu.memory_space<vmem>>, vector<36x128xbf16>
    %cst = arith.constant dense<0.000000e+00> : vector<256x128xf32>
    %6 = tpu.matmul %4, %5, %cst {dimension_numbers = #tpu.dot_dimension_numbers<[1], [0], [0], [1], [0, 0, 1, 1], [], []>} : vector<256x36xbf16>, vector<36x128xbf16>, vector<256x128xf32> -> vector<256x128xf32>
    %c0_5 = arith.constant 0 : index
    %c0_6 = arith.constant 0 : index
    %7 = vector.load %arg4[%c0_5, %c0_6] : memref<1x128xf32, #tpu.memory_space<vmem>>, vector<1x128xf32>
    %8 = vector.broadcast %7 : vector<1x128xf32> to vector<256x128xf32>
    %9 = arith.addf %6, %8 : vector<256x128xf32>
    %cst_7 = arith.constant 0.000000e+00 : f32
    %10 = vector.broadcast %cst_7 : f32 to vector<256x128xf32>
    %11 = arith.maximumf %9, %10 : vector<256x128xf32>
    %c0_8 = arith.constant 0 : index
    %c0_9 = arith.constant 0 : index
    %12 = vector.load %arg8[%c0_8, %c0_9] : memref<8x128xf32, #tpu.memory_space<vmem>>, vector<8x128xf32>
    %13 = vector.shape_cast %11 : vector<256x128xf32> to vector<32x8x128xf32>
    %cst_10 = arith.constant dense<0.000000e+00> : vector<8x128xf32>
    %14 = vector.multi_reduction <add>, %13, %cst_10 [0] : vector<32x8x128xf32> to vector<8x128xf32>
    %15 = arith.addf %12, %14 : vector<8x128xf32>
    %c0_11 = arith.constant 0 : index
    %c0_12 = arith.constant 0 : index
    %16 = vector.load %arg8[%c0_11, %c0_12] : memref<8x128xf32, #tpu.memory_space<vmem>>, vector<8x128xf32>
    tpu.vector_store %arg8[%c0_11, %c0_12], %15 {strides = array<i32>} : memref<8x128xf32, #tpu.memory_space<vmem>>, vector<8x128xf32>,
    %c0_i32_13 = arith.constant 0 : i32
    %17 = arith.cmpi eq, %arg1, %c0_i32_13 : i32
    %18 = arith.extui %17 : i1 to i32
    %c0_i32_14 = arith.constant 0 : i32
    %19 = arith.cmpi ne, %18, %c0_i32_14 : i32
    scf.if %19 {
      %c0_15 = arith.constant 0 : index
      %c0_16 = arith.constant 0 : index
      %20 = vector.load %arg8[%c0_15, %c0_16] : memref<8x128xf32, #tpu.memory_space<vmem>>, vector<8x128xf32>
      %cst_17 = arith.constant dense<0.000000e+00> : vector<128xf32>
      %21 = vector.multi_reduction <add>, %20, %cst_17 [0] : vector<8x128xf32> to vector<128xf32>
      %22 = vector.shape_cast %21 : vector<128xf32> to vector<1x128xf32>
      %cst_18 = arith.constant 3.906250e-03 : f32
      %23 = vector.broadcast %cst_18 : f32 to vector<1x128xf32>
      %24 = arith.mulf %22, %23 : vector<1x128xf32>
      %25 = vector.shape_cast %24 : vector<1x128xf32> to vector<1x128xf32>
      %26 = vector.broadcast %25 : vector<1x128xf32> to vector<8x128xf32>
      %c0_19 = arith.constant 0 : index
      %c0_20 = arith.constant 0 : index
      %27 = vector.load %arg5[%c0_19, %c0_20] : memref<128x128xf32, #tpu.memory_space<vmem>>, vector<128x128xf32>
      %cst_21 = arith.constant dense<0.000000e+00> : vector<8x128xf32>
      %28 = tpu.matmul %26, %27, %cst_21 {dimension_numbers = #tpu.dot_dimension_numbers<[1], [0], [0], [1], [0, 0, 1, 1], [], []>} : vector<8x128xf32>, vector<128x128xf32>, vector<8x128xf32> -> vector<8x128xf32>
      %c0_22 = arith.constant 0 : index
      %c0_23 = arith.constant 0 : index
      %29 = vector.load %arg6[%c0_22, %c0_23] : memref<1x128xf32, #tpu.memory_space<vmem>>, vector<1x128xf32>
      %30 = vector.broadcast %29 : vector<1x128xf32> to vector<8x128xf32>
      %31 = arith.addf %28, %30 : vector<8x128xf32>
      %c0_24 = arith.constant 0 : index
      %c0_25 = arith.constant 0 : index
      %c0_26 = arith.constant 0 : index
      %32 = vector.load %arg7[%c0_24, %c0_25, %c0_26] : memref<1x8x128xf32, #tpu.memory_space<vmem>>, vector<1x8x128xf32>
      %33 = vector.shape_cast %32 : vector<1x8x128xf32> to vector<8x128xf32>
      %34 = vector.shape_cast %31 : vector<8x128xf32> to vector<1x8x128xf32>
      tpu.vector_store %arg7[%c0_24, %c0_25, %c0_26], %34 {strides = array<i32>} : memref<1x8x128xf32, #tpu.memory_space<vmem>>, vector<1x8x128xf32>,
    } else {
    }
    return
  }
  func.func @transform_0(%arg0: i32, %arg1: i32) -> (i32, i32, i32) {
    %c0_i32 = arith.constant 0 : i32
    %c0_i32_0 = arith.constant 0 : i32
    return %arg0, %arg1, %c0_i32 : i32, i32, i32
  }
  func.func @transform_1(%arg0: i32, %arg1: i32) -> (i32, i32) {
    %c0_i32 = arith.constant 0 : i32
    %c0_i32_0 = arith.constant 0 : i32
    %c0_i32_1 = arith.constant 0 : i32
    return %c0_i32, %c0_i32_0 : i32, i32
  }
  func.func @transform_2(%arg0: i32, %arg1: i32) -> (i32, i32) {
    %c0_i32 = arith.constant 0 : i32
    %c0_i32_0 = arith.constant 0 : i32
    %c0_i32_1 = arith.constant 0 : i32
    return %c0_i32, %c0_i32_0 : i32, i32
  }
  func.func @transform_3(%arg0: i32, %arg1: i32) -> (i32, i32) {
    %c0_i32 = arith.constant 0 : i32
    %c0_i32_0 = arith.constant 0 : i32
    %c0_i32_1 = arith.constant 0 : i32
    return %c0_i32, %c0_i32_0 : i32, i32
  }
  func.func @transform_4(%arg0: i32, %arg1: i32) -> (i32, i32) {
    %c0_i32 = arith.constant 0 : i32
    %c0_i32_0 = arith.constant 0 : i32
    %c0_i32_1 = arith.constant 0 : i32
    return %c0_i32, %c0_i32_0 : i32, i32
  }
  func.func @transform_5(%arg0: i32, %arg1: i32) -> (i32, i32, i32) {
    %c0_i32 = arith.constant 0 : i32
    %c0_i32_0 = arith.constant 0 : i32
    %c0_i32_1 = arith.constant 0 : i32
    return %arg0, %c0_i32, %c0_i32_0 : i32, i32, i32
  }
}

</mosaic_0001>

<bundles_post_ra>
// kernel: tpu_custom_call.1
= control target key start
LH: loop header
LB: loop body
LE: loop exit
PB: predicated region body
PF: predicated region fallthrough
CT: control target
= control target key end

     0   :  { %10 = vsyncpa [#allocation4], 0  ;;  %s1470_s0 = inlined_call_operand.vmem [shape: bf16[2,256,36], index: 0, kind: input, shape index: {}]   ;;  %s1471_s1 = inlined_call_operand.vmem [shape: bf16[36,128], index: 1, kind: input, shape index: {}]   ;;  %s1472_s2 = inlined_call_operand.vmem [shape: f32[1,128], index: 2, kind: input, shape index: {}]   ;;  %s1473_s3 = inlined_call_operand.vmem [shape: f32[128,128], index: 3, kind: input, shape index: {}]   ;;  %s1474_s4 = inlined_call_operand.vmem [shape: f32[1,128], index: 4, kind: input, shape index: {}]   ;;  %s1475_s5 = inlined_call_operand.hbm [shape: f32[2,8,128], index: 5, kind: output, shape index: {}]  }
   0x1   :  { %12 = vsyncpa [#allocation4 + $0x1], 0  ;;  %s1222_s18 = smov 0   ;;  %s1224_s19 = smov 0  }
   0x2   :  { %s1226_s20 = smov 0   ;;  %s1228_s21 = smov 0  }
   0x3   :  { %s1230_s22 = smov 0   ;;  %s1232_s23 = smov 0  }
   0x4 LB: > { %s868_s24 = sadd.s32 4294967295, %s1187_s23   ;;  %s869_s25 = sadd.s32 4294967294, %s1187_s23   ;;  %s1187_s23 = sphi %s1232_s23, %s18_s23   ;;  %s1183_s22 = sphi %s1230_s22, %s1482_s22   ;;  %s1179_s21 = sphi %s1228_s21, %s1481_s21   ;;  %s1175_s20 = sphi %s1226_s20, %s1480_s20   ;;  %s1171_s19 = sphi %s1224_s19, %s1479_s19   ;;  %s1167_s18 = sphi %s1222_s18, %s1478_s18  }
   0x5   : > { %s30_s26 = sadd.s32 1, %s1183_s22  ;;  %s149_s27 = sadd.s32 1, %s1175_s20 }
   0x6   : > { %p32_p0 = scmp.ge.s32.totalorder %s30_s26, 2  ;;  %p159_p1 = scmp.ne.s32.totalorder %s1175_s20, %s1171_s19 }
   0x7   : > { %p160_p2 = scmp.eq.s32.totalorder %s868_s24, 1  ;;  %p165_p3 = scmp.ne.s32.totalorder %s1171_s19, %s1167_s18 }
   0x8   : > { %s1484_s26 = smov (%p32_p0, %s30_s26), 0  ;;  %p166_p5 = scmp.eq.s32.totalorder %s869_s25, 1 }
   0x9   : > { %p1262_p4 = por %p160_p2, %p159_p1  ;;  %s146_s29 = ssub.s32 %s1183_s22, %s1484_s26 }
   0xa   : > { %p872_p6 = scmp.ge.s32.totalorder %s1187_s23, 1  ;;  %p147_p7 = scmp.eq.s32.totalorder %s146_s29, 0 }
   0xb   : > { %p1269_p8 = por %p166_p5, %p165_p3  ;;  %p209_p9 = scmp.lt.s32.totalorder %s1187_s23, 3 }
   0xc   : > { %s1275_s6 = scalar_select %p147_p7, %s1175_s20, %s149_s27  }
   0xd   : > { %p210_p10 = pnand %p872_p6, %p209_p9 }
   0xe   : > { %p242_p11 = scmp.lt.s32.totalorder (!%p210_p10), %s1179_s21, 1  ;;  %s238_s7 = sand.u32 (!%p210_p10), 1, %s1171_s19  }
   0xf   : > { %213 = sbr.rel (%p210_p10) target bundleno = 520 (0x208), region = 40  ;;  %s873_s8 = sshll.u32 (!%p210_p10), %s238_s7, 3 }
  0x10   : > { %s240_s12 = scalar_lea.vmem (!%p210_p10), [#allocation3], %s873_s8  ;;  %s1191_s25 = smov (!%p210_p10), [#allocation3]  }
  0x11   : > { %s795_s13 = sshll.u32 (!%p210_p10), %s240_s12, 4  ;;  %s796_s13 = int_to_ptr.vmem [resolvable:$true] %s795_s13 }
  0x12   : > { %s1111_s24 = scalar_lea.vmem (!%p210_p10), %s796_s13, 128 }
  0x13   : > { %p1112_p12 = scmp.ne.s32.totalorder (!%p210_p10), %s796_s13, %s1111_s24 }
  0x14   : > { %v1092_v0 = vld [vmem:[%s1471_s1 + $0x10] ss:$0 sps:$4 sm:$0x33]   ;;  %vm445_vm0 = vcmask 1041408   ;;  %v1093_v1 = vld [vmem:[%s1471_s1 + $0x8] sm:$0xff]   ;;  %s243_s11 = scalar_select %p242_p11, %s1179_s21, 1 }
  0x15   : > { %1033 = vmatprep.subr.msk.bf16.mxu0 %vm445_vm0, %v1092_v0  ;;  %v447_v2 = vsel %vm445_vm0, %v1092_v0, 0  ;;  %1034 = vmatprep.subr.msk.bf16.mxu1 %vm445_vm0, %v1092_v0  ;;  %v1094_v3 = vld [vmem:[%s1471_s1] sm:$0xff]   ;;  %vm396_vm1 = vcmask 293888   ;;  %v1189_v20 = vmov 0.0   ;;  %v702_v21 = vld [vmem:[%s1473_s3 + $0x78] sm:$0xff]  ;;  %v701_v22 = vld [vmem:[%s1473_s3 + $0x70] sm:$0xff]  ;;  %p1113_p13 = pnand %p1112_p12, %p1262_p4 }
  0x16   : > { %955 = vmatpush3.bf16.msra.mxu0 %v447_v2  ;;  %1030 = vmatpush3.bf16.msra.mxu1 %v447_v2  ;;  %s917_s14 = sshll.u32 %s243_s11, 7  ;;  %v700_v23 = vld [vmem:[%s1473_s3 + $0x68] sm:$0xff]  ;;  %v699_v24 = vld [vmem:[%s1473_s3 + $0x60] sm:$0xff]  ;;  %v698_v25 = vld [vmem:[%s1473_s3 + $0x58] sm:$0xff]  ;;  %vm1190_vm2 = vmmov 0   ;;  %s914_s11 = sshll.u32 %s1179_s21, 7 }
  0x17   : > { %956 = vmatprep.subr.bf16.mxu0 %v1093_v1  ;;  %1028 = vmatprep.subr.bf16.mxu1 %v1093_v1  ;;  %s1291_s17 = scalar_lea.vmem %s1470_s0, %s917_s14  ;;  %v697_v26 = vld [vmem:[%s1473_s3 + $0x50] sm:$0xff]  ;;  %v696_v27 = vld [vmem:[%s1473_s3 + $0x48] sm:$0xff]  ;;  %v695_v28 = vld [vmem:[%s1473_s3 + $0x40] sm:$0xff]  ;;  %s1430_s16 = scalar_lea.hbm %s1475_s5, %s914_s11 }
  0x18   : > { %v1095_v4 = vld [vmem:[%s1291_s17] sm:$0xff]   ;;  %v1096_v5 = vld [vmem:[%s1291_s17 + $0x8] sm:$0xff]   ;;  %v1097_v6 = vld [vmem:[%s1291_s17 + $0x10] sm:$0xff]   ;;  %p1114_p0 = pneg %p1113_p13  ;;  %s1115_s21 = sshll.u32 %s1191_s25, 4  ;;  %s1116_s21 = int_to_ptr.vmem [resolvable:$false] %s1115_s21 }
  0x19   : > { %960 = vmatprep.mubr.msk.bf16.mxu0 %vm396_vm1, %v1095_v4  ;;  %v1103_v7 = vld [vmem:[%s1291_s17 + $0x40] sm:$0xff]   ;;  %v1104_v8 = vld [vmem:[%s1291_s17 + $0x48] sm:$0xff]   ;;  %v1105_v9 = vld [vmem:[%s1291_s17 + $0x50] sm:$0xff]   ;;  %s1117_s27 = scalar_lea.vmem %s1116_s21, 256  ;;  %p1118_p1 = scmp.lt.s32.totalorder %s796_s13, %s1116_s21 }
  0x1a   : > { %957 = vmatpush3.bf16.msra.mxu0 %v1093_v1  ;;  %1031 = vmatpush3.bf16.msra.mxu1 %v1093_v1  ;;  %v1098_v10 = vld [vmem:[%s1291_s17 + $0x18] sm:$0xff]   ;;  %v1099_v11 = vld [vmem:[%s1291_s17 + $0x20] sm:$0xff]   ;;  %v1100_v14 = vld [vmem:[%s1291_s17 + $0x28] sm:$0xff]   ;;  %p1119_p2 = scmp.lt.s32.totalorder %s1117_s27, %s1111_s24 }
  0x1b   : > { %958 = vmatprep.subr.bf16.mxu0 %v1094_v3  ;;  %1029 = vmatprep.subr.bf16.mxu1 %v1094_v3  ;;  %v1106_v12 = vld [vmem:[%s1291_s17 + $0x58] sm:$0xff]   ;;  %v1107_v13 = vld [vmem:[%s1291_s17 + $0x60] sm:$0xff]   ;;  %v1101_v15 = vld [vmem:[%s1291_s17 + $0x30] sm:$0xff]  }
  0x1c   : > { %976 = vmatprep.mubr.msk.bf16.mxu1 %vm396_vm1, %v1103_v7  ;;  %v1108_v16 = vld [vmem:[%s1291_s17 + $0x68] sm:$0xff]   ;;  %v1109_v17 = vld [vmem:[%s1291_s17 + $0x70] sm:$0xff]   ;;  %v1102_v18 = vld [vmem:[%s1291_s17 + $0x38] sm:$0xff]   ;;  %p1120_p3 = por %p1119_p2, %p1118_p1 }
  0x1d   : > { %v1110_v19 = vld [vmem:[%s1291_s17 + $0x78] sm:$0xff]   ;;  %v693_v30 = vld [vmem:[%s1473_s3 + $0x30] sm:$0xff]  ;;  %v692_v31 = vld [vmem:[%s1473_s3 + $0x28] sm:$0xff]  ;;  %s782_s17 = scalar_lea.sflag [#allocation4], %s238_s7 }
  0x1e   : > { %959 = vmatpush3.bf16.msra.mxu0 %v1094_v3  ;;  %1032 = vmatpush3.bf16.msra.mxu1 %v1094_v3  ;;  %v694_v29 = vld [vmem:[%s1473_s3 + $0x38] sm:$0xff]  ;;  %v691_v32 = vld [vmem:[%s1473_s3 + $0x20] sm:$0xff]  ;;  %v689_v34 = vld [vmem:[%s1473_s3 + $0x10] sm:$0xff]  ;;  %p1121_p5 = pnand %p1120_p3, %p1114_p0 }
  0x1f   : > { %992 = vmatprep.subr.mxu1 %v1189_v20  ;;  %v690_v33 = vld [vmem:[%s1473_s3 + $0x18] sm:$0xff]  ;;  %v688_v35 = vld [vmem:[%s1473_s3 + $0x8] sm:$0xff]  ;;  %v687_v36 = vld [vmem:[%s1473_s3] sm:$0xff] }
  0x20   : > { %v1376_v39 = vld [vmem:[%s1472_s2] ss:$0 sm:$0xff] }
  0x21   : > { %961 = vmatmul.mubr.msk.bf16.vlgmr.msra.gmra.mxu0 %vm396_vm1, %v1096_v5  ;;  %977 = vmatmul.mubr.msk.bf16.vlgmr.msra.gmra.mxu1 %vm396_vm1, %v1104_v8 }
  0x22   : > { %964 = vmatprep.mubr.msk.bf16.mxu0 %vm396_vm1, %v1097_v6  ;;  %980 = vmatprep.mubr.msk.bf16.mxu1 %vm396_vm1, %v1105_v9 }
  0x23   : > { %993 = vmatpush3.msra.mxu1 %v702_v21 }
  0x24   : > { %994 = vmatprep.subr.mxu1 %v1189_v20 }
  0x25   : > { %995 = vmatpush3.msra.mxu1 %v701_v22 }
  0x26   : > { %996 = vmatprep.subr.mxu1 %v1189_v20 }
  0x27   : > { %997 = vmatpush3.msra.mxu1 %v700_v23 }
  0x28   : > { %998 = vmatprep.subr.mxu1 %v1189_v20 }
  0x29   : > { %965 = vmatmul.mubr.msk.bf16.gmra.mxu0 %vm396_vm1, %v1098_v10  ;;  %981 = vmatmul.mubr.msk.bf16.gmra.mxu1 %vm396_vm1, %v1106_v12 }
  0x2a   : > { %968 = vmatprep.mubr.msk.bf16.mxu0 %vm396_vm1, %v1099_v11  ;;  %984 = vmatprep.mubr.msk.bf16.mxu1 %vm396_vm1, %v1107_v13 }
  0x2b   : > { %999 = vmatpush3.msra.mxu1 %v699_v24 }
  0x2c   : > { %1000 = vmatprep.subr.mxu1 %v1189_v20 }
  0x2d   : > { %1001 = vmatpush3.msra.mxu1 %v698_v25 }
  0x2e   : > { %1002 = vmatprep.subr.mxu1 %v1189_v20 }
  0x2f   : > { %1003 = vmatpush3.msra.mxu1 %v697_v26 }
  0x30   : > { %1004 = vmatprep.subr.mxu1 %v1189_v20 }
  0x31   : > { %969 = vmatmul.mubr.msk.bf16.gmra.mxu0 %vm396_vm1, %v1100_v14  ;;  %985 = vmatmul.mubr.msk.bf16.gmra.mxu1 %vm396_vm1, %v1108_v16 }
  0x32   : > { %972 = vmatprep.mubr.msk.bf16.mxu0 %vm396_vm1, %v1101_v15  ;;  %988 = vmatprep.mubr.msk.bf16.mxu1 %vm396_vm1, %v1109_v17 }
  0x33   : > { %1005 = vmatpush3.msra.mxu1 %v696_v27 }
  0x34   : > { %1006 = vmatprep.subr.mxu1 %v1189_v20 }
  0x35   : > { %1007 = vmatpush3.msra.mxu1 %v695_v28 }
  0x36   : > { %1008 = vmatprep.subr.mxu1 %v1189_v20 }
  0x37   : > { %1009 = vmatpush3.msra.mxu1 %v694_v29 }
  0x38   : > { %1010 = vmatprep.subr.mxu1 %v1189_v20 }
  0x39   : > { %973 = vmatmul.mubr.msk.bf16.gmra.mxu0 %vm396_vm1, %v1102_v18  ;;  %989 = vmatmul.mubr.msk.bf16.gmra.mxu1 %vm396_vm1, %v1110_v19 }
  0x3a   : > { %1011 = vmatpush3.msra.mxu1 %v693_v30  ;;  %1024 = vmatprep.mubr.msk.f32.mxu1 %vm1190_vm2, %v1189_v20 }
  0x3b   : > { %1012 = vmatprep.subr.mxu1 %v1189_v20 }
  0x3c   : > { %1013 = vmatpush3.msra.mxu1 %v692_v31 }
  0x3d   : > { %1014 = vmatprep.subr.mxu1 %v1189_v20 }
  0x3e   : > { %1015 = vmatpush3.msra.mxu1 %v691_v32 }
  0x3f   : > { %1016 = vmatprep.subr.mxu1 %v1189_v20 }
  0x40   : > { %1017 = vmatpush3.msra.mxu1 %v690_v33 }
  0x41   : > { %1018 = vmatprep.subr.mxu1 %v1189_v20 }
  0x42   : > { %1019 = vmatpush3.msra.mxu1 %v689_v34 }
  0x43   : > { %1020 = vmatprep.subr.mxu1 %v1189_v20 }
  0x44   : > { %1021 = vmatpush3.msra.mxu1 %v688_v35 }
  0x45   : > { %1022 = vmatprep.subr.mxu1 %v1189_v20 }
  0x46   : > { %1023 = vmatpush3.msra.mxu1 %v687_v36 }
  0xe1   : > { %v962_v37 = vpop.f32.mrf.mxu0  ;;  %v1378_v41 = vpop.f32.mrf.mxu1 }
  0xe2   : > { %v492_v45 = vadd.f32 %v962_v37, %v1376_v39 }
  0xe3   : > { %v483_v38 = vpop.f32.mrf.mxu0  ;;  %v1381_v44 = vpop.f32.mrf.mxu1 }
  0xe4   : > { %v484_v42 = vadd.f32 %v1376_v39, %v483_v38  ;;  %v612_v54 = vmax.f32 %v492_v45, 0.0 }
  0xe5   : > { %v963_v40 = vpop.f32.mrf.mxu0  ;;  %v1385_v48 = vpop.f32.mrf.mxu1 }
  0xe6   : > { %v610_v49 = vmax.f32 %v484_v42, 0.0  ;;  %v495_v50 = vadd.f32 %v963_v40, %v1376_v39 }
  0xe7   : > { %v486_v43 = vpop.f32.mrf.mxu0  ;;  %v550_v53 = vpop.f32.mrf.mxu1 }
  0xe8   : > { %v487_v46 = vadd.f32 %v1376_v39, %v486_v43  ;;  %v613_v58 = vmax.f32 %v495_v50, 0.0 }
  0xe9   : > { %v966_v47 = vpop.f32.mrf.mxu0  ;;  %v1389_v61 = vpop.f32.mrf.mxu1 }
  0xea   : > { %v611_v51 = vmax.f32 %v487_v46, 0.0  ;;  %v508_v62 = vadd.f32 %v966_v47, %v1376_v39  ;;  %v548_v46 = vadd.f32 %v1376_v39, %v1381_v44 }
  0xeb   : > { %v499_v52 = vpop.f32.mrf.mxu0  ;;  %v563_v7 = vpop.f32.mrf.mxu1 }
  0xec   : > { %v643_v55 = vadd.f32 %v611_v51, %v610_v49  ;;  %v500_v56 = vadd.f32 %v1376_v39, %v499_v52  ;;  %v616_v8 = vmax.f32 %v508_v62, 0.0  ;;  %v551_v51 = vadd.f32 %v1376_v39, %v550_v53 }
  0xed   : > { %v967_v57 = vpop.f32.mrf.mxu0  ;;  %v983_v15 = vpop.f32.mrf.mxu1  ;;  %v564_v44 = vadd.f32 %v1376_v39, %v563_v7 }
  0xee   : > { %v644_v59 = vadd.f32 %v643_v55, %v612_v54  ;;  %v614_v63 = vmax.f32 %v500_v56, 0.0  ;;  %v511_v4 = vadd.f32 %v967_v57, %v1376_v39  ;;  %v556_v54 = vadd.f32 %v1378_v41, %v1376_v39 }
  0xef   : > { %v502_v60 = vpop.f32.mrf.mxu0  ;;  %v566_v25 = vpop.f32.mrf.mxu1  ;;  %v626_v55 = vmax.f32 %v548_v46, 0.0  ;;  %v559_v57 = vadd.f32 %v1385_v48, %v1376_v39  ;;  %v572_v41 = vadd.f32 %v1389_v61, %v1376_v39  ;;  %v575_v48 = vadd.f32 %v983_v15, %v1376_v39 }
  0xf0   : > { %v645_v0 = vadd.f32 %v644_v59, %v613_v58  ;;  %v503_v1 = vadd.f32 %v1376_v39, %v502_v60  ;;  %v617_v12 = vmax.f32 %v511_v4, 0.0  ;;  %v627_v58 = vmax.f32 %v551_v51, 0.0 }
  0xf1   : > { %v970_v2 = vpop.f32.mrf.mxu0  ;;  %v986_v33 = vpop.f32.mrf.mxu1  ;;  %v628_v62 = vmax.f32 %v556_v54, 0.0  ;;  %v567_v53 = vadd.f32 %v1376_v39, %v566_v25  ;;  %v633_v7 = vmax.f32 %v575_v48, 0.0 }
  0xf2   : > { %v646_v3 = vadd.f32 %v645_v0, %v614_v63  ;;  %v615_v5 = vmax.f32 %v503_v1, 0.0  ;;  %v524_v16 = vadd.f32 %v970_v2, %v1376_v39  ;;  %v629_v0 = vmax.f32 %v559_v57, 0.0 }
  0xf3   : > { %v515_v6 = vpop.f32.mrf.mxu0  ;;  %v579_v43 = vpop.f32.mrf.mxu1 }
  0xf4   : > { %v647_v9 = vadd.f32 %v646_v3, %v615_v5  ;;  %v516_v10 = vadd.f32 %v1376_v39, %v515_v6  ;;  %v620_v26 = vmax.f32 %v524_v16, 0.0  ;;  %v630_v3 = vmax.f32 %v564_v44, 0.0 }
  0xf5   : > { %v971_v11 = vpop.f32.mrf.mxu0  ;;  %v987_v52 = vpop.f32.mrf.mxu1  ;;  %v631_v6 = vmax.f32 %v567_v53, 0.0  ;;  %v588_v16 = vadd.f32 %v986_v33, %v1376_v39 }
  0xf6   : > { %v648_v13 = vadd.f32 %v647_v9, %v616_v8  ;;  %v618_v17 = vmax.f32 %v516_v10, 0.0  ;;  %v527_v22 = vadd.f32 %v971_v11, %v1376_v39  ;;  %v632_v9 = vmax.f32 %v572_v41, 0.0 }
  0xf7   : > { %v518_v14 = vpop.f32.mrf.mxu0  ;;  %v582_v60 = vpop.f32.mrf.mxu1  ;;  %v580_v11 = vadd.f32 %v1376_v39, %v579_v43 }
  0xf8   : > { %v649_v18 = vadd.f32 %v648_v13, %v617_v12  ;;  %v519_v19 = vadd.f32 %v1376_v39, %v518_v14  ;;  %v621_v30 = vmax.f32 %v527_v22, 0.0  ;;  %v583_v13 = vadd.f32 %v1376_v39, %v582_v60 }
  0xf9   : > { %v974_v20 = vpop.f32.mrf.mxu0  ;;  %v990_v2 = vpop.f32.mrf.mxu1 }
  0xfa   : > { %v650_v21 = vadd.f32 %v649_v18, %v618_v17  ;;  %v619_v23 = vmax.f32 %v519_v19, 0.0  ;;  %v540_v34 = vadd.f32 %v974_v20, %v1376_v39  ;;  %v634_v17 = vmax.f32 %v580_v11, 0.0 }
  0xfb   : > { %v531_v24 = vpop.f32.mrf.mxu0  ;;  %v595_v8 = vpop.f32.mrf.mxu1  ;;  %v591_v19 = vadd.f32 %v987_v52, %v1376_v39  ;;  %v635_v20 = vmax.f32 %v583_v13, 0.0 }
  0xfc   : > { %v651_v27 = vadd.f32 %v650_v21, %v619_v23  ;;  %v532_v28 = vadd.f32 %v1376_v39, %v531_v24  ;;  %v624_v45 = vmax.f32 %v540_v34, 0.0  ;;  %v636_v21 = vmax.f32 %v588_v16, 0.0 }
  0xfd   : > { %v975_v29 = vpop.f32.mrf.mxu0  ;;  %v991_v14 = vpop.f32.mrf.mxu1  ;;  %v596_v23 = vadd.f32 %v1376_v39, %v595_v8  ;;  %v637_v24 = vmax.f32 %v591_v19, 0.0 }
  0xfe   : > { %v652_v31 = vadd.f32 %v651_v27, %v620_v26  ;;  %v622_v35 = vmax.f32 %v532_v28, 0.0  ;;  %v543_v40 = vadd.f32 %v975_v29, %v1376_v39  ;;  %v604_v27 = vadd.f32 %v990_v2, %v1376_v39 }
  0xff   : > { %v534_v32 = vpop.f32.mrf.mxu0  ;;  %v598_v15 = vpop.f32.mrf.mxu1  ;;  %v638_v28 = vmax.f32 %v596_v23, 0.0 }
 0x100   : > { %v653_v36 = vadd.f32 %v652_v31, %v621_v30  ;;  %v535_v37 = vadd.f32 %v1376_v39, %v534_v32  ;;  %v625_v49 = vmax.f32 %v543_v40, 0.0  ;;  %v599_v26 = vadd.f32 %v1376_v39, %v598_v15 }
 0x101   : > { %v607_v31 = vadd.f32 %v991_v14, %v1376_v39  ;;  %v640_v33 = vmax.f32 %v604_v27, 0.0  ;;  %v912_v39 = vld [vmem:[%s1474_s4] ss:$0 sm:$0xff] }
 0x102   : > { %v654_v38 = vadd.f32 %v653_v36, %v622_v35  ;;  %v623_v42 = vmax.f32 %v535_v37, 0.0  ;;  %v639_v32 = vmax.f32 %v599_v26, 0.0 }
 0x103   : > { %v641_v35 = vmax.f32 %v607_v31, 0.0 }
 0x104   : > { %v655_v47 = vadd.f32 %v654_v38, %v623_v42 }
 0x106   : > { %v656_v50 = vadd.f32 %v655_v47, %v624_v45 }
 0x108   : > { %v657_v56 = vadd.f32 %v656_v50, %v625_v49 }
 0x10a   : > { %v658_v59 = vadd.f32 %v657_v56, %v626_v55 }
 0x10c   : > { %v659_v63 = vadd.f32 %v658_v59, %v627_v58 }
 0x10e   : > { %v660_v1 = vadd.f32 %v659_v63, %v628_v62 }
 0x110   : > { %v661_v4 = vadd.f32 %v660_v1, %v629_v0 }
 0x112   : > { %v662_v5 = vadd.f32 %v661_v4, %v630_v3 }
 0x114   : > { %v663_v10 = vadd.f32 %v662_v5, %v631_v6 }
 0x116   : > { %v664_v12 = vadd.f32 %v663_v10, %v632_v9 }
 0x118   : > { %v665_v61 = vadd.f32 %v664_v12, %v633_v7 }
 0x11a   : > { %v666_v18 = vadd.f32 %v665_v61, %v634_v17 }
 0x11c   : > { %v667_v22 = vadd.f32 %v666_v18, %v635_v20 }
 0x11e   : > { %v668_v25 = vadd.f32 %v667_v22, %v636_v21 }
 0x120   : > { %v669_v29 = vadd.f32 %v668_v25, %v637_v24 }
 0x122   : > { %v670_v30 = vadd.f32 %v669_v29, %v638_v28 }
 0x124   : > { %v671_v34 = vadd.f32 %v670_v30, %v639_v32 }
 0x126   : > { %v672_v36 = vadd.f32 %v671_v34, %v640_v33 }
 0x128   : > { %v673_v37 = vadd.f32 %v672_v36, %v641_v35 }
 0x12a   : > { %v680_v38 = vrot.slane %v673_v37, 4 }
 0x12c   : > { %v681_v40 = vadd.f32 %v680_v38, %v673_v37 }
 0x12e   : > { %v682_v42 = vrot.slane %v681_v40, 2 }
 0x130   : > { %v683_v43 = vadd.f32 %v682_v42, %v681_v40 }
 0x132   : > { %v684_v45 = vrot.slane %v683_v43, 1 }
 0x134   : > { %v685_v46 = vadd.f32 %v684_v45, %v683_v43 }
 0x136   : > { %v686_v47 = vmul.f32 0.00390625, %v685_v46 }
 0x138   : > { %1025 = vmatmul.mubr.f32.vlgmr.msra.gmra.mxu1 %v686_v47 }
 0x1f8   : > { %v776_v49 = vpop.f32.mrf.mxu1 }
 0x1f9   : > { %v777_v50 = vadd.f32 %v912_v39, %v776_v49 }
 0x1fa   : > { %v1026_v51 = vpop.f32.mrf.mxu1 }
 0x1fb   : > { %780 = vst [vmem:[%s240_s12] sm:$0xff] %v777_v50 }
 0x1fc   : > { %1124 = shalt.err (!%p1121_p5)
}
 0x1fd   : > { %s1125_s29 = scalar_lea.hbm %s1430_s16, 128  ;;  %s1129_s9 = scalar_lea.hbm %s1475_s5, 256 }
 0x1fe   : > { %p1126_p6 = scmp.ne.s32.totalorder %s1430_s16, %s1125_s29  ;;  %p1130_p10 = scmp.lt.s32.totalorder %s1430_s16, %s1475_s5 }
 0x1ff   : > { %p1131_p11 = scmp.lt.s32.totalorder %s1129_s9, %s1125_s29 }
 0x200   : > { %p1127_p7 = pnand %p1126_p6, %p1262_p4 }
 0x201   : > { %p1132_p12 = por %p1131_p11, %p1130_p10 }
 0x202   : > { %p1128_p9 = pneg %p1127_p7 }
 0x204   : > { %p1133_p13 = pnand %p1132_p12, %p1128_p9 }
 0x206   : > { %1136 = shalt.err (!%p1133_p13)
}
 0x207   : > { %1035 = dma.vmem_to_hbm [thread:$0]  (%p1262_p4), %s796_s13, 128, %s1430_s16, %s782_s17  }
 0x208 PF: > { %p1041_p0 = scmp.ge.s32.totalorder %s1187_s23, 2  ;;  %s807_s12 = sand.u32 1, %s1167_s18  }
 0x209   : > { %s808_s14 = scalar_lea.sflag [#allocation4], %s807_s12 }
 0x20a   : > { %p1038_p1 = pnand %p1041_p0, %p1269_p8 }
 0x20c   : > { %p1039_p2 = pneg %p1038_p1 }
 0x20e   : > { %1162 = dma.done.wait (%p1039_p2), %s808_s14, 128  }
 0x20f   : > { %1164 = vsyncadd (%p1039_p2), %s808_s14, 4294967168  ;;  %s18_s23 = sadd.s32 1, %s1187_s23   ;;  %s1478_s18 = smov %s1171_s19 }
 0x210   : > { %p15_p3 = scmp.ge.s32.totalorder %s18_s23, 4   ;;  %s1479_s19 = smov %s1175_s20 }
 0x211   : > { %s1480_s20 = smov %s1275_s6  ;;  %s1481_s21 = smov %s1183_s22 }
 0x212   : > { %s1482_s22 = smov %s1484_s26  ;;  %17 = sbr.rel (!%p15_p3) target bundleno = 4 (0x4), region = 83 }
 0x217   :  { %813 = vsyncpa [#allocation4], 1 }
 0x218   :  { %815 = vsyncpa [#allocation4 + $0x1], 1 }

</bundles_post_ra>
